<compile_context>
chip_gen: v5e
topology: v5e:2x2
jax: 0.10.0
libtpu: 0.0.40
codegen_flags: <defaults>
</compile_context>

<pallas_src>
import math
import functools

import jax
import jax.numpy as jnp
from jax.experimental import pallas as pl
from jax.experimental.pallas import tpu as pltpu


# ----------------------------------------------------------------------------
# Tiling / layout helpers
# ----------------------------------------------------------------------------
def _row_tiling(rows: int, max_tile: int):
    """Row-axis tiling: (tile_r, num_blocks, valid_rows_in_last_block).

    tile_r is either the full row count (single block; any size is legal when
    the block dim equals the array dim) or max_tile (a multiple of 8) with a
    cdiv grid and in-kernel masking of the ragged last block.  Never exceeds
    max_tile when rows > max_tile, so VMEM use stays bounded."""
    assert max_tile % 8 == 0
    if rows <= max_tile:
        return rows, 1, rows
    nblk = -(-rows // max_tile)
    return max_tile, nblk, rows - (nblk - 1) * max_tile


def _pick_shards(rows: int, shards: int, min_rows_per_shard: int) -> int:
    """Row-reduction shard count. Engages the 2nd TensorCore on v7x via a
    'parallel' grid axis; harmless no-op on single-TC v5e/v6e."""
    if shards > 1 and rows % shards == 0 and rows // shards >= min_rows_per_shard:
        return shards
    return 1


def _to_row_slab4(x):
    """(N, C, H, W) -> (N, C, rows, 128) lane-dense view.

    Pure reshape whenever H*W % 128 == 0 (all practical training crops).
    TODO(synk): the rare H*W % 128 != 0 case falls back to jnp.pad (one extra
    HBM copy); padding is identical for x_hat/target so it adds 0 to the SSE."""
    N, C, H, W = x.shape
    P = H * W
    pad = (-P) % 128
    x = x.reshape(N, C, P)
    if pad:
        x = jnp.pad(x, ((0, 0), (0, 0), (0, pad)))
    return x.reshape(N, C, (P + pad) // 128, 128)


# ----------------------------------------------------------------------------
# Kernel 1: per-(batch, shard, channel) sum of squared errors.
#   inputs : x, t viewed as (N, 3, S, Rs, 128); block = (1, 3, 1, tile_r, 128)
#   grid   : (N, S, nblk)   N, S = "parallel"; row blocks = reduction
#   output : (N, S, 3, 1) partial SSE (summed over (N, S) in the wrapper)
# ----------------------------------------------------------------------------
def _sse_kernel(x_ref, t_ref, o_ref, acc_ref, *, tile_r, valid_last):
    r = pl.program_id(2)
    last = pl.num_programs(2) - 1

    # Pure VPU inner loop; in-VMEM upcast (callers may pass bf16 inputs).
    d = x_ref[...].astype(jnp.float32) - t_ref[...].astype(jnp.float32)
    sq = d * d
    if valid_last != tile_r:                           # static: ragged last block
        row = jax.lax.broadcasted_iota(jnp.int32, sq.shape, 1)
        limit = jnp.where(r == last, valid_last, tile_r)
        sq = jnp.where(row < limit, sq, 0.0)           # OOB rows contribute 0

    @pl.when(r == 0)
    def _():                                           # first step: direct store
        acc_ref[...] = sq

    @pl.when(r != 0)
    def _():
        acc_ref[...] += sq

    @pl.when(r == last)
    def _():                                           # one deferred XLU reduce
        s = jnp.sum(acc_ref[...], axis=2)              # lane reduce -> (3, tile_r)
        o_ref[...] = jnp.sum(s, axis=1, keepdims=True)  # -> (3, 1)


def channel_sse(x4, t4, *, max_tile_rows=1024, shards=2, min_rows_per_shard=256):
    N, C, R, L = x4.shape
    assert C == 3 and L == 128 and x4.shape == t4.shape
    S = _pick_shards(R, shards, min_rows_per_shard)
    Rs = R // S
    x5 = x4.reshape(N, C, S, Rs, L)                    # free bitcast
    t5 = t4.reshape(N, C, S, Rs, L)
    tile_r, nblk, valid_last = _row_tiling(Rs, max_tile_rows)

    blk = (None, 3, None, tile_r, 128)
    kern = functools.partial(_sse_kernel, tile_r=tile_r, valid_last=valid_last)
    return pl.pallas_call(
        kern,
        out_shape=jax.ShapeDtypeStruct((N, S, 3, 1), jnp.float32),
        grid_spec=pltpu.PrefetchScalarGridSpec(
            num_scalar_prefetch=0,
            grid=(N, S, nblk),
            in_specs=[
                pl.BlockSpec(blk, lambda n, s, r: (n, 0, s, r, 0)),
                pl.BlockSpec(blk, lambda n, s, r: (n, 0, s, r, 0)),
            ],
            out_specs=pl.BlockSpec((None, None, 3, 1),
                                   lambda n, s, r: (n, s, 0, 0)),
            scratch_shapes=[pltpu.VMEM((3, tile_r, 128), jnp.float32)],
        ),
        compiler_params=pltpu.CompilerParams(
            dimension_semantics=("parallel", "parallel", "arbitrary")),
    )(x5, t5)


# ----------------------------------------------------------------------------
# Kernel 2: sum of log(likelihoods) over a (rows, 128) slab.
#   grid   : (S, nblk)   S = "parallel" shard; row blocks = reduction
#   output : scalar (shard partials summed in the wrapper)
# ----------------------------------------------------------------------------
def _logsum_kernel(l_ref, o_ref, acc_ref, *, tile_r, valid_last):
    i = pl.program_id(1)
    last = pl.num_programs(1) - 1

    x = l_ref[...].astype(jnp.float32)
    if valid_last != tile_r:                           # static: ragged last block
        row = jax.lax.broadcasted_iota(jnp.int32, x.shape, 0)
        limit = jnp.where(i == last, valid_last, tile_r)
        x = jnp.where(row < limit, x, 1.0)             # log(1) = 0
    lg = jnp.log(x)

    @pl.when(i == 0)
    def _():                                           # first step: direct store
        acc_ref[...] = lg

    @pl.when(i != 0)
    def _():
        acc_ref[...] += lg

    @pl.when(i == last)
    def _():
        s = jnp.sum(acc_ref[...], axis=1, keepdims=True)   # (tile_r, 1)
        o_ref[...] = jnp.sum(s, axis=0, keepdims=True)     # (1, 1)


def total_log_sum(slab, *, max_tile_rows=2048, shards=2, min_rows_per_shard=256):
    R, L = slab.shape
    assert L == 128
    S = _pick_shards(R, shards, min_rows_per_shard)
    Rs = R // S
    slab3 = slab.reshape(S, Rs, L)                     # free bitcast
    tile_r, nblk, valid_last = _row_tiling(Rs, max_tile_rows)
    kern = functools.partial(_logsum_kernel, tile_r=tile_r, valid_last=valid_last)
    out = pl.pallas_call(
        kern,
        out_shape=jax.ShapeDtypeStruct((S, 1, 1), jnp.float32),
        grid_spec=pltpu.PrefetchScalarGridSpec(
            num_scalar_prefetch=0,
            grid=(S, nblk),
            in_specs=[pl.BlockSpec((None, tile_r, 128), lambda s, r: (s, r, 0))],
            out_specs=pl.BlockSpec((None, 1, 1), lambda s, r: (s, 0, 0)),
            scratch_shapes=[pltpu.VMEM((tile_r, 128), jnp.float32)],
        ),
        compiler_params=pltpu.CompilerParams(
            dimension_semantics=("parallel", "arbitrary")),
    )(slab3)
    return jnp.sum(out)


# ----------------------------------------------------------------------------
# Rate path dispatch: tiny tensors -> fused XLA; big ones -> Pallas log-sum.
# ----------------------------------------------------------------------------
_PALLAS_LOGSUM_MIN_ELEMS = 1 << 15   # below this, XLA fuses the log-sum for free


def _likelihood_log_sum(v):
    flat = jnp.ravel(v)                                # free reshape
    n = flat.shape[0]
    if n < _PALLAS_LOGSUM_MIN_ELEMS:
        return jnp.sum(jnp.log(flat.astype(jnp.float32)))
    main = (n // 128) * 128
    total = total_log_sum(flat[:main].reshape(-1, 128))
    if main != n:   # ragged tail (< 128 elems): fused XLA epilogue, no pad copy
        total = total + jnp.sum(jnp.log(flat[main:].astype(jnp.float32)))
    return total


# ----------------------------------------------------------------------------
# Wrapper reproducing RateDistortionLoss.forward(output, target, Test=False)
# ----------------------------------------------------------------------------
_LAMBDA_MSE_QUALITY_MAP = {
    1: 0.0016, 2: 0.0035, 3: 0.005, 4: 0.0067, 5: 0.01, 6: 0.013, 7: 0.02,
    8: 0.025, 9: 0.0483, 10: 0.0932, 11: 0.1366, 12: 0.18, 13: 0.25,
    14: 0.36, 15: 0.43, 16: 0.5,
}


def rate_distortion_loss(x_hat, target, likelihoods, *,
                         quality=5, k_msssim=0.0, k_mse=1.0,
                         yuv_weight=(1.0, 1.0, 1.0)):
    lmbda_mse = _LAMBDA_MSE_QUALITY_MAP[quality]
    lmbda_msssim = lmbda_mse * 1275.0  # noqa: F841 (used only by ms_ssim path)

    N, C, H, W = target.shape
    assert C == 3
    num_pixels = N * H * W

    # Distortion path: lane-dense NCHW views (no transpose, no wrapper upcast).
    sse_per_ns = channel_sse(_to_row_slab4(x_hat), _to_row_slab4(target))
    sse = jnp.sum(sse_per_ns, axis=(0, 1))             # (3, 1)
    mse_y = sse[0, 0] / num_pixels
    mse_cb = sse[1, 0] / num_pixels
    mse_cr = sse[2, 0] / num_pixels

    # Rate path.
    log_sum = 0.0
    for v in likelihoods.values():
        log_sum = log_sum + _likelihood_log_sum(v)

    out = {}
    out["bpp_loss"] = log_sum / (-math.log(2.0) * num_pixels)
    out["distortion_loss_Y"] = mse_y
    out["distortion_loss_Cb"] = mse_cb
    out["distortion_loss_Cr"] = mse_cr

    w0, w1, w2 = yuv_weight
    dist_mse = (w0 * mse_y + w1 * mse_cb + w2 * mse_cr) / float(sum(yuv_weight))
    dist_mse = dist_mse * lmbda_mse * 255.0 ** 2
    out["distortion_mse"] = dist_mse

    if k_msssim == 0:
        out["distortion_msssim"] = dist_mse
    else:
        # TODO(synk): ms_ssim (multi-scale structural similarity) has no clean
        # single-kernel Pallas equivalent here; only the k_msssim==0 path of
        # the module is implemented.
        out["distortion_msssim"] = dist_mse

    out["distortion_loss"] = (out["distortion_msssim"] * k_msssim
                              + out["distortion_mse"] * k_mse)
    out["loss"] = out["bpp_loss"] + out["distortion_loss"]
    return out


# ----------------------------------------------------------------------------
# Pure-JAX reference for correctness checks.
# ----------------------------------------------------------------------------
def _reference(x_hat, target, likelihoods, *, quality=5, k_msssim=0.0,
               k_mse=1.0, yuv_weight=(1.0, 1.0, 1.0)):
    lmbda_mse = _LAMBDA_MSE_QUALITY_MAP[quality]
    N, _, H, W = target.shape
    num_pixels = N * H * W
    bpp = sum(jnp.sum(jnp.log(v)) / (-math.log(2.0) * num_pixels)
              for v in likelihoods.values())
    mses = [jnp.mean((x_hat[:, i:i + 1] - target[:, i:i + 1]) ** 2)
            for i in range(3)]
    w = yuv_weight
    dmse = (w[0] * mses[0] + w[1] * mses[1] + w[2] * mses[2]) / sum(w)
    dmse = dmse * lmbda_mse * 255.0 ** 2
    dloss = dmse * k_msssim + dmse * k_mse
    return bpp + dloss


if __name__ == "__main__":
    key = jax.random.PRNGKey(0)
    keys = jax.random.split(key, 8)

    # --- main loss check (small shapes) --------------------------------------
    N, H, W = 2, 16, 16
    target = jax.random.uniform(keys[0], (N, 3, H, W), jnp.float32)
    x_hat = jnp.clip(target + 0.05 * jax.random.normal(keys[1], (N, 3, H, W)),
                     0.0, 1.0)
    likelihoods = {
        # big enough for the Pallas log-sum path (also exercises shard axis)
        "y": jax.random.uniform(keys[2], (N, 32, 32, 32), jnp.float32,
                                minval=0.05, maxval=1.0),
        # tiny -> fused XLA path
        "z": jax.random.uniform(keys[3], (N, 8, 4, 4), jnp.float32,
                                minval=0.05, maxval=1.0),
        # size not a multiple of 128 -> Pallas main + XLA tail
        "w": jax.random.uniform(keys[4], (1, 1, 180, 184), jnp.float32,
                                minval=0.05, maxval=1.0),
    }

    loss_fn = jax.jit(functools.partial(
        rate_distortion_loss, quality=5, k_msssim=0.0, k_mse=1.0))
    out = loss_fn(x_hat, target, likelihoods)
    loss = jax.block_until_ready(out["loss"])
    ref = jax.block_until_ready(_reference(x_hat, target, likelihoods,
                                           quality=5, k_msssim=0.0, k_mse=1.0))
    assert jnp.allclose(loss, ref, rtol=1e-4, atol=1e-4), (loss, ref)

    # --- exercise sharded + ragged-last-block (masked) paths at small scale ---
    xb = jax.random.normal(keys[5], (1, 3, 40, 64), jnp.float32)   # rows = 20
    tb = jax.random.normal(keys[6], (1, 3, 40, 64), jnp.float32)
    sse_p = jnp.sum(channel_sse(_to_row_slab4(xb), _to_row_slab4(tb),
                                max_tile_rows=8, shards=2,
                                min_rows_per_shard=1),
                    axis=(0, 1))[:, 0]
    sse_r = jnp.sum((xb - tb) ** 2, axis=(0, 2, 3))
    assert jnp.allclose(sse_p, sse_r, rtol=1e-4, atol=1e-3), (sse_p, sse_r)

    lk = jax.random.uniform(keys[7], (20, 128), jnp.float32,
                            minval=0.05, maxval=1.0)
    ls_p = total_log_sum(lk, max_tile_rows=8, shards=2, min_rows_per_shard=1)
    ls_r = jnp.sum(jnp.log(lk))
    assert jnp.allclose(ls_p, ls_r, rtol=1e-4, atol=1e-3), (ls_p, ls_r)

    print("KERNEL_OK")
</pallas_src>

<mosaic_0001>
module attributes {stable_mosaic.version = 11 : i64} {
  func.func @_logsum_kernel(%arg0: i32, %arg1: i32, %arg2: memref<1x258x128xf32, #tpu.memory_space<vmem>>, %arg3: memref<1x1x1xf32, #tpu.memory_space<vmem>>, %arg4: memref<258x128xf32, #tpu.memory_space<vmem>>) attributes {dimension_semantics = [#tpu.dimension_semantics<parallel>, #tpu.dimension_semantics<arbitrary>], iteration_bounds = array<i64: 1, 1>, scalar_prefetch = 0 : i64, scratch_operands = 1 : i64, tpu.core_type = #tpu.core_type<tc>, window_params = [{transform_indices = @transform_0, window_bounds = array<i64: 1, 258, 128>}, {transform_indices = @transform_1, window_bounds = array<i64: 1, 1, 1>}]} {
    %c0 = arith.constant 0 : index
    %c0_0 = arith.constant 0 : index
    %c0_1 = arith.constant 0 : index
    %0 = vector.load %arg2[%c0, %c0_0, %c0_1] : memref<1x258x128xf32, #tpu.memory_space<vmem>>, vector<1x258x128xf32>
    %1 = vector.shape_cast %0 : vector<1x258x128xf32> to vector<258x128xf32>
    %2 = math.log %1 : vector<258x128xf32>
    %c0_i32 = arith.constant 0 : i32
    %3 = arith.cmpi eq, %arg1, %c0_i32 : i32
    %4 = arith.extui %3 : i1 to i32
    %c0_i32_2 = arith.constant 0 : i32
    %5 = arith.cmpi ne, %4, %c0_i32_2 : i32
    scf.if %5 {
      %c0_7 = arith.constant 0 : index
      %c0_8 = arith.constant 0 : index
      %12 = vector.load %arg4[%c0_7, %c0_8] : memref<258x128xf32, #tpu.memory_space<vmem>>, vector<258x128xf32>
      tpu.vector_store %arg4[%c0_7, %c0_8], %2 {strides = array<i32>} : memref<258x128xf32, #tpu.memory_space<vmem>>, vector<258x128xf32>,
    } else {
    }
    %c0_i32_3 = arith.constant 0 : i32
    %6 = arith.cmpi ne, %arg1, %c0_i32_3 : i32
    %7 = arith.extui %6 : i1 to i32
    %c0_i32_4 = arith.constant 0 : i32
    %8 = arith.cmpi ne, %7, %c0_i32_4 : i32
    scf.if %8 {
      %c0_7 = arith.constant 0 : index
      %c0_8 = arith.constant 0 : index
      %12 = vector.load %arg4[%c0_7, %c0_8] : memref<258x128xf32, #tpu.memory_space<vmem>>, vector<258x128xf32>
      %13 = arith.addf %12, %2 : vector<258x128xf32>
      %c0_9 = arith.constant 0 : index
      %c0_10 = arith.constant 0 : index
      %14 = vector.load %arg4[%c0_9, %c0_10] : memref<258x128xf32, #tpu.memory_space<vmem>>, vector<258x128xf32>
      tpu.vector_store %arg4[%c0_9, %c0_10], %13 {strides = array<i32>} : memref<258x128xf32, #tpu.memory_space<vmem>>, vector<258x128xf32>,
    } else {
    }
    %c0_i32_5 = arith.constant 0 : i32
    %9 = arith.cmpi eq, %arg1, %c0_i32_5 : i32
    %10 = arith.extui %9 : i1 to i32
    %c0_i32_6 = arith.constant 0 : i32
    %11 = arith.cmpi ne, %10, %c0_i32_6 : i32
    scf.if %11 {
      %c0_7 = arith.constant 0 : index
      %c0_8 = arith.constant 0 : index
      %12 = vector.load %arg4[%c0_7, %c0_8] : memref<258x128xf32, #tpu.memory_space<vmem>>, vector<258x128xf32>
      %cst = arith.constant dense<0.000000e+00> : vector<258xf32>
      %13 = vector.multi_reduction <add>, %12, %cst [1] : vector<258x128xf32> to vector<258xf32>
      %14 = vector.shape_cast %13 : vector<258xf32> to vector<258x1xf32>
      %cst_9 = arith.constant dense<0.000000e+00> : vector<1xf32>
      %15 = vector.multi_reduction <add>, %14, %cst_9 [0] : vector<258x1xf32> to vector<1xf32>
      %16 = vector.shape_cast %15 : vector<1xf32> to vector<1x1xf32>
      %c0_10 = arith.constant 0 : index
      %c0_11 = arith.constant 0 : index
      %c0_12 = arith.constant 0 : index
      %17 = vector.load %arg3[%c0_10, %c0_11, %c0_12] : memref<1x1x1xf32, #tpu.memory_space<vmem>>, vector<1x1x1xf32>
      %18 = vector.shape_cast %17 : vector<1x1x1xf32> to vector<1x1xf32>
      %19 = vector.shape_cast %16 : vector<1x1xf32> to vector<1x1x1xf32>
      tpu.vector_store %arg3[%c0_10, %c0_11, %c0_12], %19 {strides = array<i32>} : memref<1x1x1xf32, #tpu.memory_space<vmem>>, vector<1x1x1xf32>,
    } else {
    }
    return
  }
  func.func @transform_0(%arg0: i32, %arg1: i32) -> (i32, i32, i32) {
    %c0_i32 = arith.constant 0 : i32
    %c0_i32_0 = arith.constant 0 : i32
    return %arg0, %arg1, %c0_i32 : i32, i32, i32
  }
  func.func @transform_1(%arg0: i32, %arg1: i32) -> (i32, i32, i32) {
    %c0_i32 = arith.constant 0 : i32
    %c0_i32_0 = arith.constant 0 : i32
    %c0_i32_1 = arith.constant 0 : i32
    return %arg0, %c0_i32, %c0_i32_0 : i32, i32, i32
  }
}

module attributes {stable_mosaic.version = 11 : i64} {
  func.func @_logsum_kernel(%arg0: i32, %arg1: i32, %arg2: memref<1x256x128xf32, #tpu.memory_space<vmem>>, %arg3: memref<1x1x1xf32, #tpu.memory_space<vmem>>, %arg4: memref<256x128xf32, #tpu.memory_space<vmem>>) attributes {dimension_semantics = [#tpu.dimension_semantics<parallel>, #tpu.dimension_semantics<arbitrary>], iteration_bounds = array<i64: 2, 1>, scalar_prefetch = 0 : i64, scratch_operands = 1 : i64, tpu.core_type = #tpu.core_type<tc>, window_params = [{transform_indices = @transform_0, window_bounds = array<i64: 1, 256, 128>}, {transform_indices = @transform_1, window_bounds = array<i64: 1, 1, 1>}]} {
    %c0 = arith.constant 0 : index
    %c0_0 = arith.constant 0 : index
    %c0_1 = arith.constant 0 : index
    %0 = vector.load %arg2[%c0, %c0_0, %c0_1] : memref<1x256x128xf32, #tpu.memory_space<vmem>>, vector<1x256x128xf32>
    %1 = vector.shape_cast %0 : vector<1x256x128xf32> to vector<256x128xf32>
    %2 = math.log %1 : vector<256x128xf32>
    %c0_i32 = arith.constant 0 : i32
    %3 = arith.cmpi eq, %arg1, %c0_i32 : i32
    %4 = arith.extui %3 : i1 to i32
    %c0_i32_2 = arith.constant 0 : i32
    %5 = arith.cmpi ne, %4, %c0_i32_2 : i32
    scf.if %5 {
      %c0_7 = arith.constant 0 : index
      %c0_8 = arith.constant 0 : index
      %12 = vector.load %arg4[%c0_7, %c0_8] : memref<256x128xf32, #tpu.memory_space<vmem>>, vector<256x128xf32>
      tpu.vector_store %arg4[%c0_7, %c0_8], %2 {strides = array<i32>} : memref<256x128xf32, #tpu.memory_space<vmem>>, vector<256x128xf32>,
    } else {
    }
    %c0_i32_3 = arith.constant 0 : i32
    %6 = arith.cmpi ne, %arg1, %c0_i32_3 : i32
    %7 = arith.extui %6 : i1 to i32
    %c0_i32_4 = arith.constant 0 : i32
    %8 = arith.cmpi ne, %7, %c0_i32_4 : i32
    scf.if %8 {
      %c0_7 = arith.constant 0 : index
      %c0_8 = arith.constant 0 : index
      %12 = vector.load %arg4[%c0_7, %c0_8] : memref<256x128xf32, #tpu.memory_space<vmem>>, vector<256x128xf32>
      %13 = arith.addf %12, %2 : vector<256x128xf32>
      %c0_9 = arith.constant 0 : index
      %c0_10 = arith.constant 0 : index
      %14 = vector.load %arg4[%c0_9, %c0_10] : memref<256x128xf32, #tpu.memory_space<vmem>>, vector<256x128xf32>
      tpu.vector_store %arg4[%c0_9, %c0_10], %13 {strides = array<i32>} : memref<256x128xf32, #tpu.memory_space<vmem>>, vector<256x128xf32>,
    } else {
    }
    %c0_i32_5 = arith.constant 0 : i32
    %9 = arith.cmpi eq, %arg1, %c0_i32_5 : i32
    %10 = arith.extui %9 : i1 to i32
    %c0_i32_6 = arith.constant 0 : i32
    %11 = arith.cmpi ne, %10, %c0_i32_6 : i32
    scf.if %11 {
      %c0_7 = arith.constant 0 : index
      %c0_8 = arith.constant 0 : index
      %12 = vector.load %arg4[%c0_7, %c0_8] : memref<256x128xf32, #tpu.memory_space<vmem>>, vector<256x128xf32>
      %cst = arith.constant dense<0.000000e+00> : vector<256xf32>
      %13 = vector.multi_reduction <add>, %12, %cst [1] : vector<256x128xf32> to vector<256xf32>
      %14 = vector.shape_cast %13 : vector<256xf32> to vector<256x1xf32>
      %cst_9 = arith.constant dense<0.000000e+00> : vector<1xf32>
      %15 = vector.multi_reduction <add>, %14, %cst_9 [0] : vector<256x1xf32> to vector<1xf32>
      %16 = vector.shape_cast %15 : vector<1xf32> to vector<1x1xf32>
      %c0_10 = arith.constant 0 : index
      %c0_11 = arith.constant 0 : index
      %c0_12 = arith.constant 0 : index
      %17 = vector.load %arg3[%c0_10, %c0_11, %c0_12] : memref<1x1x1xf32, #tpu.memory_space<vmem>>, vector<1x1x1xf32>
      %18 = vector.shape_cast %17 : vector<1x1x1xf32> to vector<1x1xf32>
      %19 = vector.shape_cast %16 : vector<1x1xf32> to vector<1x1x1xf32>
      tpu.vector_store %arg3[%c0_10, %c0_11, %c0_12], %19 {strides = array<i32>} : memref<1x1x1xf32, #tpu.memory_space<vmem>>, vector<1x1x1xf32>,
    } else {
    }
    return
  }
  func.func @transform_0(%arg0: i32, %arg1: i32) -> (i32, i32, i32) {
    %c0_i32 = arith.constant 0 : i32
    %c0_i32_0 = arith.constant 0 : i32
    return %arg0, %arg1, %c0_i32 : i32, i32, i32
  }
  func.func @transform_1(%arg0: i32, %arg1: i32) -> (i32, i32, i32) {
    %c0_i32 = arith.constant 0 : i32
    %c0_i32_0 = arith.constant 0 : i32
    %c0_i32_1 = arith.constant 0 : i32
    return %arg0, %c0_i32, %c0_i32_0 : i32, i32, i32
  }
}

module attributes {stable_mosaic.version = 11 : i64} {
  func.func @_sse_kernel(%arg0: i32, %arg1: i32, %arg2: i32, %arg3: memref<1x3x1x2x128xf32, #tpu.memory_space<vmem>>, %arg4: memref<1x3x1x2x128xf32, #tpu.memory_space<vmem>>, %arg5: memref<1x1x3x1xf32, #tpu.memory_space<vmem>>, %arg6: memref<3x2x128xf32, #tpu.memory_space<vmem>>) attributes {dimension_semantics = [#tpu.dimension_semantics<parallel>, #tpu.dimension_semantics<parallel>, #tpu.dimension_semantics<arbitrary>], iteration_bounds = array<i64: 2, 1, 1>, scalar_prefetch = 0 : i64, scratch_operands = 1 : i64, tpu.core_type = #tpu.core_type<tc>, window_params = [{transform_indices = @transform_0, window_bounds = array<i64: 1, 3, 1, 2, 128>}, {transform_indices = @transform_1, window_bounds = array<i64: 1, 3, 1, 2, 128>}, {transform_indices = @transform_2, window_bounds = array<i64: 1, 1, 3, 1>}]} {
    %c0 = arith.constant 0 : index
    %c0_0 = arith.constant 0 : index
    %c0_1 = arith.constant 0 : index
    %c0_2 = arith.constant 0 : index
    %c0_3 = arith.constant 0 : index
    %0 = vector.load %arg3[%c0, %c0_0, %c0_1, %c0_2, %c0_3] : memref<1x3x1x2x128xf32, #tpu.memory_space<vmem>>, vector<1x3x1x2x128xf32>
    %1 = vector.shape_cast %0 : vector<1x3x1x2x128xf32> to vector<3x2x128xf32>
    %c0_4 = arith.constant 0 : index
    %c0_5 = arith.constant 0 : index
    %c0_6 = arith.constant 0 : index
    %c0_7 = arith.constant 0 : index
    %c0_8 = arith.constant 0 : index
    %2 = vector.load %arg4[%c0_4, %c0_5, %c0_6, %c0_7, %c0_8] : memref<1x3x1x2x128xf32, #tpu.memory_space<vmem>>, vector<1x3x1x2x128xf32>
    %3 = vector.shape_cast %2 : vector<1x3x1x2x128xf32> to vector<3x2x128xf32>
    %4 = arith.subf %1, %3 : vector<3x2x128xf32>
    %5 = arith.mulf %4, %4 : vector<3x2x128xf32>
    %c0_i32 = arith.constant 0 : i32
    %6 = arith.cmpi eq, %arg2, %c0_i32 : i32
    %7 = arith.extui %6 : i1 to i32
    %c0_i32_9 = arith.constant 0 : i32
    %8 = arith.cmpi ne, %7, %c0_i32_9 : i32
    scf.if %8 {
      %c0_14 = arith.constant 0 : index
      %c0_15 = arith.constant 0 : index
      %c0_16 = arith.constant 0 : index
      %15 = vector.load %arg6[%c0_14, %c0_15, %c0_16] : memref<3x2x128xf32, #tpu.memory_space<vmem>>, vector<3x2x128xf32>
      tpu.vector_store %arg6[%c0_14, %c0_15, %c0_16], %5 {strides = array<i32>} : memref<3x2x128xf32, #tpu.memory_space<vmem>>, vector<3x2x128xf32>,
    } else {
    }
    %c0_i32_10 = arith.constant 0 : i32
    %9 = arith.cmpi ne, %arg2, %c0_i32_10 : i32
    %10 = arith.extui %9 : i1 to i32
    %c0_i32_11 = arith.constant 0 : i32
    %11 = arith.cmpi ne, %10, %c0_i32_11 : i32
    scf.if %11 {
      %c0_14 = arith.constant 0 : index
      %c0_15 = arith.constant 0 : index
      %c0_16 = arith.constant 0 : index
      %15 = vector.load %arg6[%c0_14, %c0_15, %c0_16] : memref<3x2x128xf32, #tpu.memory_space<vmem>>, vector<3x2x128xf32>
      %16 = arith.addf %15, %5 : vector<3x2x128xf32>
      %c0_17 = arith.constant 0 : index
      %c0_18 = arith.constant 0 : index
      %c0_19 = arith.constant 0 : index
      %17 = vector.load %arg6[%c0_17, %c0_18, %c0_19] : memref<3x2x128xf32, #tpu.memory_space<vmem>>, vector<3x2x128xf32>
      tpu.vector_store %arg6[%c0_17, %c0_18, %c0_19], %16 {strides = array<i32>} : memref<3x2x128xf32, #tpu.memory_space<vmem>>, vector<3x2x128xf32>,
    } else {
    }
    %c0_i32_12 = arith.constant 0 : i32
    %12 = arith.cmpi eq, %arg2, %c0_i32_12 : i32
    %13 = arith.extui %12 : i1 to i32
    %c0_i32_13 = arith.constant 0 : i32
    %14 = arith.cmpi ne, %13, %c0_i32_13 : i32
    scf.if %14 {
      %c0_14 = arith.constant 0 : index
      %c0_15 = arith.constant 0 : index
      %c0_16 = arith.constant 0 : index
      %15 = vector.load %arg6[%c0_14, %c0_15, %c0_16] : memref<3x2x128xf32, #tpu.memory_space<vmem>>, vector<3x2x128xf32>
      %cst = arith.constant dense<0.000000e+00> : vector<3x2xf32>
      %16 = vector.multi_reduction <add>, %15, %cst [2] : vector<3x2x128xf32> to vector<3x2xf32>
      %cst_17 = arith.constant dense<0.000000e+00> : vector<3xf32>
      %17 = vector.multi_reduction <add>, %16, %cst_17 [1] : vector<3x2xf32> to vector<3xf32>
      %18 = vector.shape_cast %17 : vector<3xf32> to vector<3x1xf32>
      %c0_18 = arith.constant 0 : index
      %c0_19 = arith.constant 0 : index
      %c0_20 = arith.constant 0 : index
      %c0_21 = arith.constant 0 : index
      %19 = vector.load %arg5[%c0_18, %c0_19, %c0_20, %c0_21] : memref<1x1x3x1xf32, #tpu.memory_space<vmem>>, vector<1x1x3x1xf32>
      %20 = vector.shape_cast %19 : vector<1x1x3x1xf32> to vector<3x1xf32>
      %21 = vector.shape_cast %18 : vector<3x1xf32> to vector<1x1x3x1xf32>
      tpu.vector_store %arg5[%c0_18, %c0_19, %c0_20, %c0_21], %21 {strides = array<i32>} : memref<1x1x3x1xf32, #tpu.memory_space<vmem>>, vector<1x1x3x1xf32>,
    } else {
    }
    return
  }
  func.func @transform_0(%arg0: i32, %arg1: i32, %arg2: i32) -> (i32, i32, i32, i32, i32) {
    %c0_i32 = arith.constant 0 : i32
    %c0_i32_0 = arith.constant 0 : i32
    %c0_i32_1 = arith.constant 0 : i32
    return %arg0, %c0_i32, %arg1, %arg2, %c0_i32_0 : i32, i32, i32, i32, i32
  }
  func.func @transform_1(%arg0: i32, %arg1: i32, %arg2: i32) -> (i32, i32, i32, i32, i32) {
    %c0_i32 = arith.constant 0 : i32
    %c0_i32_0 = arith.constant 0 : i32
    %c0_i32_1 = arith.constant 0 : i32
    return %arg0, %c0_i32, %arg1, %arg2, %c0_i32_0 : i32, i32, i32, i32, i32
  }
  func.func @transform_2(%arg0: i32, %arg1: i32, %arg2: i32) -> (i32, i32, i32, i32) {
    %c0_i32 = arith.constant 0 : i32
    %c0_i32_0 = arith.constant 0 : i32
    %c0_i32_1 = arith.constant 0 : i32
    return %arg0, %arg1, %c0_i32, %c0_i32_0 : i32, i32, i32, i32
  }
}

</mosaic_0001>

<bundles_post_ra>
// kernel: rate_distortion_loss.4
= control target key start
LH: loop header
LB: loop body
LE: loop exit
PB: predicated region body
PF: predicated region fallthrough
CT: control target
= control target key end

     0   :  { %s617_s0 = inlined_call_operand.vmem [shape: f32[1,258,128], index: 0, kind: input, shape index: {}]   ;;  %s618_s1 = inlined_call_operand.hbm [shape: f32[1,1,1], index: 1, kind: output, shape index: {}]  }
   0x1   :  { %v9_v0 = vld [vmem:[%s617_s0] sm:$0xff]  ;;  %v11_v1 = vld [vmem:[%s617_s0 + $0x10] sm:$0xff]  ;;  %v10_v3 = vld [vmem:[%s617_s0 + $0x8] sm:$0xff] }
   0x2   :  { %v13_v2 = vld [vmem:[%s617_s0 + $0x20] sm:$0xff]  ;;  %410 = vlog2.f32 %v9_v0  ;;  %v12_v4 = vld [vmem:[%s617_s0 + $0x18] sm:$0xff]  ;;  %v14_v5 = vld [vmem:[%s617_s0 + $0x28] sm:$0xff] }
   0x3   :  { %412 = vlog2.f32 %v11_v1  ;;  %v15_v6 = vld [vmem:[%s617_s0 + $0x30] sm:$0xff]  ;;  %v16_v7 = vld [vmem:[%s617_s0 + $0x38] sm:$0xff] }
   0x4   :  { %414 = vlog2.f32 %v13_v2 }
   0x5   :  { %416 = vlog2.f32 %v10_v3 }
   0x6   :  { %418 = vlog2.f32 %v12_v4 }
   0x7   :  { %6 = vsyncpa [#allocation4], 0  ;;  %420 = vlog2.f32 %v14_v5  ;;  %v17_v8 = vld [vmem:[%s617_s0 + $0x40] sm:$0xff]  ;;  %v18_v10 = vld [vmem:[%s617_s0 + $0x48] sm:$0xff]  ;;  %vm348_vm0 = vcmask 1041408   ;;  %s400_s17 = sshll.u32 %s618_s1, 4  ;;  %s401_s17 = int_to_ptr.hbm [resolvable:$true] %s400_s17 }
   0x8   :  { %v411_v9 = vpop.eup %410  ;;  %422 = vlog2.f32 %v15_v6  ;;  %v19_v13 = vld [vmem:[%s617_s0 + $0x50] sm:$0xff]  ;;  %v20_v16 = vld [vmem:[%s617_s0 + $0x58] sm:$0xff]  ;;  %v21_v19 = vld [vmem:[%s617_s0 + $0x60] sm:$0xff]  ;;  %vm391_vm1 = vcmask 0  }
   0x9   :  { %v413_v11 = vpop.eup %412  ;;  %v43_v12 = vmul.f32 0.6931472, %v411_v9  ;;  %424 = vlog2.f32 %v16_v7  ;;  %v22_v22 = vld [vmem:[%s617_s0 + $0x68] sm:$0xff]  ;;  %v23_v25 = vld [vmem:[%s617_s0 + $0x70] sm:$0xff]  ;;  %v24_v28 = vld [vmem:[%s617_s0 + $0x78] sm:$0xff] }
   0xa   :  { %v415_v14 = vpop.eup %414  ;;  %v47_v15 = vmul.f32 0.6931472, %v413_v11  ;;  %426 = vlog2.f32 %v17_v8  ;;  %v25_v31 = vld [vmem:[%s617_s0 + $0x80] sm:$0xff]  ;;  %v26_v34 = vld [vmem:[%s617_s0 + $0x88] sm:$0xff]  ;;  %v27_v37 = vld [vmem:[%s617_s0 + $0x90] sm:$0xff] }
   0xb   :  { %v417_v17 = vpop.eup %416  ;;  %284 = vadd.xlane.f32.xlu0 %v43_v12  ;;  %v51_v18 = vmul.f32 0.6931472, %v415_v14  ;;  %428 = vlog2.f32 %v18_v10  ;;  %v28_v42 = vld [vmem:[%s617_s0 + $0x98] sm:$0xff]  ;;  %v29_v45 = vld [vmem:[%s617_s0 + $0xa0] sm:$0xff]  ;;  %v30_v56 = vld [vmem:[%s617_s0 + $0xa8] sm:$0xff] }
   0xc   :  { %v419_v20 = vpop.eup %418  ;;  %288 = vadd.xlane.f32.xlu1 %v47_v15  ;;  %v45_v21 = vmul.f32 0.6931472, %v417_v17  ;;  %430 = vlog2.f32 %v19_v13  ;;  %v31_v61 = vld [vmem:[%s617_s0 + $0xb0] sm:$0xff]  ;;  %v32_v0 = vld [vmem:[%s617_s0 + $0xb8] sm:$0xff]  ;;  %v33_v4 = vld [vmem:[%s617_s0 + $0xc0] sm:$0xff] }
   0xd   :  { %v421_v23 = vpop.eup %420  ;;  %292 = vadd.xlane.f32.xlu2 %v51_v18  ;;  %v49_v24 = vmul.f32 0.6931472, %v419_v20  ;;  %432 = vlog2.f32 %v20_v16  ;;  %v34_v8 = vld [vmem:[%s617_s0 + $0xc8] sm:$0xff]  ;;  %v35_v10 = vld [vmem:[%s617_s0 + $0xd0] sm:$0xff]  ;;  %v36_v13 = vld [vmem:[%s617_s0 + $0xd8] sm:$0xff] }
   0xe   :  { %v423_v26 = vpop.eup %422  ;;  %v53_v27 = vmul.f32 0.6931472, %v421_v23  ;;  %434 = vlog2.f32 %v21_v19  ;;  %v37_v17 = vld [vmem:[%s617_s0 + $0xe0] sm:$0xff]  ;;  %v38_v20 = vld [vmem:[%s617_s0 + $0xe8] sm:$0xff]  ;;  %v39_v23 = vld [vmem:[%s617_s0 + $0xf0] sm:$0xff] }
   0xf   :  { %v425_v29 = vpop.eup %424  ;;  %v55_v30 = vmul.f32 0.6931472, %v423_v26  ;;  %436 = vlog2.f32 %v22_v22  ;;  %v41_v18 = vld [vmem:[%s617_s0 + $0x100] sm:$0x3] }
  0x10   :  { %v427_v32 = vpop.eup %426  ;;  %v57_v33 = vmul.f32 0.6931472, %v425_v29  ;;  %438 = vlog2.f32 %v23_v25 }
  0x11   :  { %v429_v35 = vpop.eup %428  ;;  %v59_v36 = vmul.f32 0.6931472, %v427_v32  ;;  %440 = vlog2.f32 %v24_v28 }
  0x12   :  { %v431_v38 = vpop.eup %430  ;;  %v61_v39 = vmul.f32 0.6931472, %v429_v35  ;;  %442 = vlog2.f32 %v25_v31 }
  0x13   :  { %v433_v40 = vpop.eup %432  ;;  %286 = vadd.xlane.f32.xlu0 %v45_v21  ;;  %v63_v41 = vmul.f32 0.6931472, %v431_v38  ;;  %444 = vlog2.f32 %v26_v34 }
  0x14   :  { %v435_v43 = vpop.eup %434  ;;  %290 = vadd.xlane.f32.xlu1 %v49_v24  ;;  %v65_v44 = vmul.f32 0.6931472, %v433_v40  ;;  %446 = vlog2.f32 %v27_v37 }
  0x15   :  { %v437_v46 = vpop.eup %436  ;;  %294 = vadd.xlane.f32.xlu2 %v53_v27  ;;  %v67_v47 = vmul.f32 0.6931472, %v435_v43  ;;  %448 = vlog2.f32 %v28_v42  ;;  %v40_v27 = vld [vmem:[%s617_s0 + $0xf8] sm:$0xff]  ;;  %s502_s0 = smov [#allocation3]  }
  0x16   :  { %v439_v48 = vpop.eup %438  ;;  %v69_v49 = vmul.f32 0.6931472, %v437_v46  ;;  %450 = vlog2.f32 %v29_v45  ;;  %s398_s14 = sshll.u32 %s502_s0, 4  ;;  %s399_s14 = int_to_ptr.vmem [resolvable:$true] %s398_s14 }
  0x17   :  { %v441_v50 = vpop.eup %440  ;;  %v71_v51 = vmul.f32 0.6931472, %v439_v48  ;;  %452 = vlog2.f32 %v30_v56 }
  0x18   :  { %v443_v52 = vpop.eup %442  ;;  %v73_v53 = vmul.f32 0.6931472, %v441_v50  ;;  %454 = vlog2.f32 %v31_v61 }
  0x19   :  { %v445_v54 = vpop.eup %444  ;;  %v75_v55 = vmul.f32 0.6931472, %v443_v52  ;;  %456 = vlog2.f32 %v32_v0 }
  0x1a   :  { %v447_v57 = vpop.eup %446  ;;  %v77_v58 = vmul.f32 0.6931472, %v445_v54  ;;  %458 = vlog2.f32 %v33_v4 }
  0x1b   :  { %v449_v59 = vpop.eup %448  ;;  %296 = vadd.xlane.f32.xlu0 %v55_v30  ;;  %v79_v60 = vmul.f32 0.6931472, %v447_v57  ;;  %460 = vlog2.f32 %v34_v8 }
  0x1c   :  { %v451_v62 = vpop.eup %450  ;;  %298 = vadd.xlane.f32.xlu1 %v57_v33  ;;  %v81_v63 = vmul.f32 0.6931472, %v449_v59  ;;  %462 = vlog2.f32 %v35_v10 }
  0x1d   :  { %300 = vadd.xlane.f32.xlu2 %v59_v36  ;;  %v83_v1 = vmul.f32 0.6931472, %v451_v62  ;;  %v453_v2 = vpop.eup %452  ;;  %464 = vlog2.f32 %v36_v13 }
  0x1e   :  { %v85_v3 = vmul.f32 0.6931472, %v453_v2  ;;  %v455_v5 = vpop.eup %454  ;;  %466 = vlog2.f32 %v37_v17 }
  0x1f   :  { %v457_v6 = vpop.eup %456  ;;  %v87_v7 = vmul.f32 0.6931472, %v455_v5  ;;  %468 = vlog2.f32 %v38_v20 }
  0x20   :  { %v89_v9 = vmul.f32 0.6931472, %v457_v6  ;;  %v459_v11 = vpop.eup %458  ;;  %470 = vlog2.f32 %v41_v18 }
  0x21   :  { %v91_v12 = vmul.f32 0.6931472, %v459_v11  ;;  %v461_v14 = vpop.eup %460  ;;  %472 = vlog2.f32 %v39_v23 }
  0x22   :  { %v463_v15 = vpop.eup %462  ;;  %v93_v16 = vmul.f32 0.6931472, %v461_v14  ;;  %474 = vlog2.f32 %v40_v27 }
  0x23   :  { %302 = vadd.xlane.f32.xlu0 %v61_v39  ;;  %v95_v19 = vmul.f32 0.6931472, %v463_v15  ;;  %v465_v21 = vpop.eup %464 }
  0x24   :  { %304 = vadd.xlane.f32.xlu1 %v63_v41  ;;  %v97_v22 = vmul.f32 0.6931472, %v465_v21  ;;  %v467_v24 = vpop.eup %466 }
  0x25   :  { %306 = vadd.xlane.f32.xlu2 %v65_v44  ;;  %v469_v25 = vpop.eup %468  ;;  %v99_v26 = vmul.f32 0.6931472, %v467_v24 }
  0x26   :  { %v471_v28 = vpop.eup %470  ;;  %v101_v29 = vmul.f32 0.6931472, %v469_v25 }
  0x27   :  { %v107_v30 = vmul.f32 0.6931472, %v471_v28  ;;  %v473_v31 = vpop.eup %472 }
  0x28   :  { %v103_v32 = vmul.f32 0.6931472, %v473_v31  ;;  %v475_v33 = vpop.eup %474 }
  0x29   :  { %144 = vst [vmem:[#allocation2 + $0xa0] sm:$0x3] %v107_v30  ;;  %v105_v34 = vmul.f32 0.6931472, %v475_v33 }
  0x2b   :  { %308 = vadd.xlane.f32.xlu0 %v67_v47 }
  0x2c   :  { %310 = vadd.xlane.f32.xlu1 %v69_v49 }
  0x2d   :  { %312 = vadd.xlane.f32.xlu2 %v71_v51 }
  0x30   :  { %v283_v35 = vld [vmem:[#allocation2 + $0xa0] sm:$0x3] }
  0x31   :  { %v349_v36 = vsel %vm348_vm0, %v283_v35, 0.0 }
  0x33   :  { %314 = vadd.xlane.f32.xlu0 %v73_v53 }
  0x34   :  { %316 = vadd.xlane.f32.xlu1 %v75_v55 }
  0x35   :  { %318 = vadd.xlane.f32.xlu2 %v77_v58 }
  0x3b   :  { %320 = vadd.xlane.f32.xlu0 %v79_v60 }
  0x3c   :  { %322 = vadd.xlane.f32.xlu1 %v81_v63 }
  0x3d   :  { %324 = vadd.xlane.f32.xlu2 %v83_v1 }
  0x43   :  { %326 = vadd.xlane.f32.xlu0 %v85_v3 }
  0x44   :  { %328 = vadd.xlane.f32.xlu1 %v87_v7 }
  0x45   :  { %330 = vadd.xlane.f32.xlu2 %v89_v9 }
  0x4b   :  { %332 = vadd.xlane.f32.xlu0 %v91_v12 }
  0x4c   :  { %334 = vadd.xlane.f32.xlu1 %v93_v16 }
  0x4d   :  { %336 = vadd.xlane.f32.xlu2 %v95_v19 }
  0x53   :  { %338 = vadd.xlane.f32.xlu0 %v97_v22 }
  0x54   :  { %340 = vadd.xlane.f32.xlu1 %v99_v26 }
  0x55   :  { %342 = vadd.xlane.f32.xlu2 %v101_v29 }
  0x5b   :  { %344 = vadd.xlane.f32.xlu0 %v103_v32 }
  0x5c   :  { %346 = vadd.xlane.f32.xlu1 %v105_v34 }
  0x5d   :  { %350 = vadd.xlane.f32.xlu2 %v349_v36 }
  0x7e   :  { %v285_v37 = vpop.xlane.xlu0 %284 }
  0x7f   :  { %v289_v38 = vpop.xlane.xlu1 %288 }
  0x80   :  { %v293_v39 = vpop.xlane.xlu2 %292 }
  0x86   :  { %v287_v40 = vpop.xlane.xlu0 %286 }
  0x87   :  { %v352_v41 = vadd.f32 %v287_v40, %v285_v37  ;;  %v291_v42 = vpop.xlane.xlu1 %290 }
  0x88   :  { %v295_v43 = vpop.xlane.xlu2 %294 }
  0x89   :  { %v353_v44 = vadd.f32 %v352_v41, %v289_v38 }
  0x8b   :  { %v354_v45 = vadd.f32 %v353_v44, %v291_v42 }
  0x8d   :  { %v355_v46 = vadd.f32 %v354_v45, %v293_v39 }
  0x8e   :  { %v297_v47 = vpop.xlane.xlu0 %296 }
  0x8f   :  { %v356_v48 = vadd.f32 %v355_v46, %v295_v43  ;;  %v299_v49 = vpop.xlane.xlu1 %298 }
  0x90   :  { %v301_v50 = vpop.xlane.xlu2 %300 }
  0x91   :  { %v357_v51 = vadd.f32 %v356_v48, %v297_v47 }
  0x93   :  { %v358_v52 = vadd.f32 %v357_v51, %v299_v49 }
  0x95   :  { %v359_v53 = vadd.f32 %v358_v52, %v301_v50 }
  0x96   :  { %v303_v54 = vpop.xlane.xlu0 %302 }
  0x97   :  { %v360_v55 = vadd.f32 %v359_v53, %v303_v54  ;;  %v305_v56 = vpop.xlane.xlu1 %304 }
  0x98   :  { %v307_v57 = vpop.xlane.xlu2 %306 }
  0x99   :  { %v361_v58 = vadd.f32 %v360_v55, %v305_v56 }
  0x9b   :  { %v362_v59 = vadd.f32 %v361_v58, %v307_v57 }
  0x9e   :  { %v309_v60 = vpop.xlane.xlu0 %308 }
  0x9f   :  { %v363_v61 = vadd.f32 %v362_v59, %v309_v60  ;;  %v311_v62 = vpop.xlane.xlu1 %310 }
  0xa0   :  { %v313_v63 = vpop.xlane.xlu2 %312 }
  0xa1   :  { %v364_v0 = vadd.f32 %v363_v61, %v311_v62 }
  0xa3   :  { %v365_v1 = vadd.f32 %v364_v0, %v313_v63 }
  0xa6   :  { %v315_v2 = vpop.xlane.xlu0 %314 }
  0xa7   :  { %v366_v3 = vadd.f32 %v365_v1, %v315_v2  ;;  %v317_v4 = vpop.xlane.xlu1 %316 }
  0xa8   :  { %v319_v5 = vpop.xlane.xlu2 %318 }
  0xa9   :  { %v367_v6 = vadd.f32 %v366_v3, %v317_v4 }
  0xab   :  { %v368_v7 = vadd.f32 %v367_v6, %v319_v5 }
  0xae   :  { %v321_v8 = vpop.xlane.xlu0 %320 }
  0xaf   :  { %v369_v9 = vadd.f32 %v368_v7, %v321_v8  ;;  %v323_v10 = vpop.xlane.xlu1 %322 }
  0xb0   :  { %v325_v11 = vpop.xlane.xlu2 %324 }
  0xb1   :  { %v370_v12 = vadd.f32 %v369_v9, %v323_v10 }
  0xb3   :  { %v371_v13 = vadd.f32 %v370_v12, %v325_v11 }
  0xb6   :  { %v327_v14 = vpop.xlane.xlu0 %326 }
  0xb7   :  { %v372_v15 = vadd.f32 %v371_v13, %v327_v14  ;;  %v329_v16 = vpop.xlane.xlu1 %328 }
  0xb8   :  { %v331_v17 = vpop.xlane.xlu2 %330 }
  0xb9   :  { %v373_v18 = vadd.f32 %v372_v15, %v329_v16 }
  0xbb   :  { %v374_v19 = vadd.f32 %v373_v18, %v331_v17 }
  0xbe   :  { %v333_v20 = vpop.xlane.xlu0 %332 }
  0xbf   :  { %v375_v21 = vadd.f32 %v374_v19, %v333_v20  ;;  %v335_v22 = vpop.xlane.xlu1 %334 }
  0xc0   :  { %v337_v23 = vpop.xlane.xlu2 %336 }
  0xc1   :  { %v376_v24 = vadd.f32 %v375_v21, %v335_v22 }
  0xc3   :  { %v377_v25 = vadd.f32 %v376_v24, %v337_v23 }
  0xc6   :  { %v339_v26 = vpop.xlane.xlu0 %338 }
  0xc7   :  { %v378_v27 = vadd.f32 %v377_v25, %v339_v26  ;;  %v341_v28 = vpop.xlane.xlu1 %340 }
  0xc8   :  { %v343_v29 = vpop.xlane.xlu2 %342 }
  0xc9   :  { %v379_v30 = vadd.f32 %v378_v27, %v341_v28 }
  0xcb   :  { %v380_v31 = vadd.f32 %v379_v30, %v343_v29 }
  0xce   :  { %v345_v32 = vpop.xlane.xlu0 %344 }
  0xcf   :  { %v381_v33 = vadd.f32 %v380_v31, %v345_v32  ;;  %v347_v34 = vpop.xlane.xlu1 %346 }
  0xd0   :  { %v351_v35 = vpop.xlane.xlu2 %350 }
  0xd1   :  { %v382_v36 = vadd.f32 %v381_v33, %v347_v34  ;;  %v383_v37 = vsel %vm348_vm0, %v351_v35, 0.0 }
  0xd3   :  { %v384_v38 = vadd.f32 %v383_v37, %v382_v36 }
  0xd5   :  { %v385_v39 = vrot.slane %v384_v38, 4 }
  0xd7   :  { %v386_v40 = vadd.f32 %v385_v39, %v384_v38 }
  0xd9   :  { %v387_v41 = vrot.slane %v386_v40, 2 }
  0xdb   :  { %v388_v42 = vadd.f32 %v387_v41, %v386_v40 }
  0xdd   :  { %v389_v43 = vrot.slane %v388_v42, 1 }
  0xdf   :  { %v390_v44 = vadd.f32 %v389_v43, %v388_v42 }
  0xe1   :  { %392 = vst.msk [vmem:[#allocation3] sm:$0x1] %vm391_vm1, %v390_v44 }
  0xe2   :  { %403 = dma.vmem_to_hbm [thread:$0]  %s399_s14, 16, %s401_s17, [#allocation4]  }
  0xe3   :  { %500 = dma.done.wait [#allocation4], 16  }
  0xe4   :  { %501 = vsyncadd [#allocation4], 4294967280 }
  0xe5   :  { %408 = vsyncpa [#allocation4], 1 }

// kernel: rate_distortion_loss.5
= control target key start
LH: loop header
LB: loop body
LE: loop exit
PB: predicated region body
PF: predicated region fallthrough
CT: control target
= control target key end

     0   :  { %s704_s6 = smov 0   ;;  %s706_s7 = smov 0   ;;  %s775_s0 = inlined_call_operand.vmem [shape: f32[2,256,128], index: 0, kind: input, shape index: {}]   ;;  %s776_s1 = inlined_call_operand.vmem [shape: f32[2,1,1], index: 1, kind: output, shape index: {}]  }
   0x1   :  { %s708_s8 = smov 0  }
   0x2 LB: > { %s23_s9 = sadd.s32 1, %s688_s7  ;;  %p576_p0 = scmp.ge.s32.totalorder %s692_s8, 1  ;;  %s692_s8 = sphi %s708_s8, %s11_s8   ;;  %s688_s7 = sphi %s706_s7, %s778_s7   ;;  %s684_s6 = sphi %s704_s6, %s777_s6  }
   0x3   : > { %p25_p1 = scmp.ge.s32.totalorder %s23_s9, 2  ;;  %p106_p2 = scmp.lt.s32.totalorder %s692_s8, 3 }
   0x5   : > { %s780_s9 = smov (%p25_p1, %s23_s9), 0  ;;  %p107_p3 = pnand %p576_p0, %p106_p2 }
   0x6   : > { %p129_p4 = scmp.lt.s32.totalorder (!%p107_p3), %s684_s6, 1 }
   0x7   : > { %110 = sbr.rel (%p107_p3) target bundleno = 238 (0xee), region = 24 }
   0xc   : > { %s782_s6 = smov (!%p129_p4, %s684_s6), 1  ;;  %vm509_vm0 = vcmask 0  }
   0xd   : > { %s581_s10 = sshll.u32 %s782_s6, 8  ;;  %s140_s16 = scalar_lea.vmem %s776_s1, %s782_s6 }
   0xe   : > { %s728_s13 = scalar_lea.vmem %s775_s0, %s581_s10 }
   0xf   : > { %v141_v0 = vld [vmem:[%s728_s13] sm:$0xff]  ;;  %v143_v1 = vld [vmem:[%s728_s13 + $0x10] sm:$0xff]  ;;  %v142_v3 = vld [vmem:[%s728_s13 + $0x8] sm:$0xff] }
  0x10   : > { %v145_v2 = vld [vmem:[%s728_s13 + $0x20] sm:$0xff]  ;;  %606 = vlog2.f32 %v141_v0  ;;  %v144_v4 = vld [vmem:[%s728_s13 + $0x18] sm:$0xff]  ;;  %v146_v5 = vld [vmem:[%s728_s13 + $0x28] sm:$0xff] }
  0x11   : > { %608 = vlog2.f32 %v143_v1  ;;  %v147_v12 = vld [vmem:[%s728_s13 + $0x30] sm:$0xff]  ;;  %v148_v14 = vld [vmem:[%s728_s13 + $0x38] sm:$0xff]  ;;  %v149_v16 = vld [vmem:[%s728_s13 + $0x40] sm:$0xff] }
  0x12   : > { %610 = vlog2.f32 %v145_v2  ;;  %v150_v21 = vld [vmem:[%s728_s13 + $0x48] sm:$0xff]  ;;  %v151_v23 = vld [vmem:[%s728_s13 + $0x50] sm:$0xff]  ;;  %v152_v25 = vld [vmem:[%s728_s13 + $0x58] sm:$0xff] }
  0x13   : > { %612 = vlog2.f32 %v142_v3  ;;  %v153_v30 = vld [vmem:[%s728_s13 + $0x60] sm:$0xff]  ;;  %v154_v32 = vld [vmem:[%s728_s13 + $0x68] sm:$0xff]  ;;  %v155_v34 = vld [vmem:[%s728_s13 + $0x70] sm:$0xff] }
  0x14   : > { %614 = vlog2.f32 %v144_v4  ;;  %v156_v39 = vld [vmem:[%s728_s13 + $0x78] sm:$0xff]  ;;  %v157_v41 = vld [vmem:[%s728_s13 + $0x80] sm:$0xff]  ;;  %v158_v43 = vld [vmem:[%s728_s13 + $0x88] sm:$0xff] }
  0x15   : > { %616 = vlog2.f32 %v146_v5  ;;  %v159_v48 = vld [vmem:[%s728_s13 + $0x90] sm:$0xff]  ;;  %v160_v50 = vld [vmem:[%s728_s13 + $0x98] sm:$0xff]  ;;  %v161_v52 = vld [vmem:[%s728_s13 + $0xa0] sm:$0xff] }
  0x16   : > { %v607_v6 = vpop.eup %606  ;;  %618 = vlog2.f32 %v147_v12  ;;  %v162_v57 = vld [vmem:[%s728_s13 + $0xa8] sm:$0xff]  ;;  %v163_v59 = vld [vmem:[%s728_s13 + $0xb0] sm:$0xff]  ;;  %v164_v61 = vld [vmem:[%s728_s13 + $0xb8] sm:$0xff] }
  0x17   : > { %v609_v7 = vpop.eup %608  ;;  %v174_v8 = vmul.f32 0.6931472, %v607_v6  ;;  %620 = vlog2.f32 %v148_v14  ;;  %v165_v2 = vld [vmem:[%s728_s13 + $0xc0] sm:$0xff]  ;;  %v166_v4 = vld [vmem:[%s728_s13 + $0xc8] sm:$0xff]  ;;  %v167_v6 = vld [vmem:[%s728_s13 + $0xd0] sm:$0xff] }
  0x18   : > { %v611_v9 = vpop.eup %610  ;;  %v178_v10 = vmul.f32 0.6931472, %v609_v7  ;;  %622 = vlog2.f32 %v149_v16 }
  0x19   : > { %408 = vadd.xlane.f32.xlu0 %v174_v8  ;;  %v182_v11 = vmul.f32 0.6931472, %v611_v9  ;;  %v613_v13 = vpop.eup %612  ;;  %624 = vlog2.f32 %v150_v21 }
  0x1a   : > { %412 = vadd.xlane.f32.xlu1 %v178_v10  ;;  %v615_v15 = vpop.eup %614  ;;  %v176_v18 = vmul.f32 0.6931472, %v613_v13  ;;  %626 = vlog2.f32 %v151_v23  ;;  %v169_v13 = vld [vmem:[%s728_s13 + $0xe0] sm:$0xff] }
  0x1b   : > { %416 = vadd.xlane.f32.xlu2 %v182_v11  ;;  %v617_v17 = vpop.eup %616  ;;  %v180_v19 = vmul.f32 0.6931472, %v615_v15  ;;  %628 = vlog2.f32 %v152_v25  ;;  %v168_v11 = vld [vmem:[%s728_s13 + $0xd8] sm:$0xff]  ;;  %v170_v15 = vld [vmem:[%s728_s13 + $0xe8] sm:$0xff] }
  0x1c   : > { %v184_v20 = vmul.f32 0.6931472, %v617_v17  ;;  %v619_v22 = vpop.eup %618  ;;  %630 = vlog2.f32 %v153_v30 }
  0x1d   : > { %v621_v24 = vpop.eup %620  ;;  %v186_v27 = vmul.f32 0.6931472, %v619_v22  ;;  %632 = vlog2.f32 %v154_v32  ;;  %v172_v22 = vld [vmem:[%s728_s13 + $0xf8] sm:$0xff] }
  0x1e   : > { %v623_v26 = vpop.eup %622  ;;  %v188_v28 = vmul.f32 0.6931472, %v621_v24  ;;  %634 = vlog2.f32 %v155_v34 }
  0x1f   : > { %v190_v29 = vmul.f32 0.6931472, %v623_v26  ;;  %v625_v31 = vpop.eup %624  ;;  %636 = vlog2.f32 %v156_v39 }
  0x20   : > { %v627_v33 = vpop.eup %626  ;;  %v192_v36 = vmul.f32 0.6931472, %v625_v31  ;;  %638 = vlog2.f32 %v157_v41 }
  0x21   : > { %410 = vadd.xlane.f32.xlu0 %v176_v18  ;;  %v629_v35 = vpop.eup %628  ;;  %v194_v37 = vmul.f32 0.6931472, %v627_v33  ;;  %640 = vlog2.f32 %v158_v43 }
  0x22   : > { %414 = vadd.xlane.f32.xlu1 %v180_v19  ;;  %v196_v38 = vmul.f32 0.6931472, %v629_v35  ;;  %v631_v40 = vpop.eup %630  ;;  %642 = vlog2.f32 %v159_v48 }
  0x23   : > { %418 = vadd.xlane.f32.xlu2 %v184_v20  ;;  %v633_v42 = vpop.eup %632  ;;  %v198_v45 = vmul.f32 0.6931472, %v631_v40  ;;  %644 = vlog2.f32 %v160_v50  ;;  %v171_v20 = vld [vmem:[%s728_s13 + $0xf0] sm:$0xff] }
  0x24   : > { %v635_v44 = vpop.eup %634  ;;  %v200_v46 = vmul.f32 0.6931472, %v633_v42  ;;  %646 = vlog2.f32 %v161_v52 }
  0x25   : > { %v202_v47 = vmul.f32 0.6931472, %v635_v44  ;;  %v637_v49 = vpop.eup %636  ;;  %648 = vlog2.f32 %v162_v57 }
  0x26   : > { %v639_v51 = vpop.eup %638  ;;  %v204_v54 = vmul.f32 0.6931472, %v637_v49  ;;  %650 = vlog2.f32 %v163_v59 }
  0x27   : > { %v641_v53 = vpop.eup %640  ;;  %v206_v55 = vmul.f32 0.6931472, %v639_v51  ;;  %652 = vlog2.f32 %v164_v61 }
  0x28   : > { %v208_v56 = vmul.f32 0.6931472, %v641_v53  ;;  %v643_v58 = vpop.eup %642  ;;  %654 = vlog2.f32 %v165_v2 }
  0x29   : > { %420 = vadd.xlane.f32.xlu0 %v186_v27  ;;  %v645_v60 = vpop.eup %644  ;;  %v210_v63 = vmul.f32 0.6931472, %v643_v58  ;;  %656 = vlog2.f32 %v166_v4 }
  0x2a   : > { %422 = vadd.xlane.f32.xlu1 %v188_v28  ;;  %v647_v62 = vpop.eup %646  ;;  %v212_v0 = vmul.f32 0.6931472, %v645_v60  ;;  %658 = vlog2.f32 %v167_v6 }
  0x2b   : > { %424 = vadd.xlane.f32.xlu2 %v190_v29  ;;  %v214_v1 = vmul.f32 0.6931472, %v647_v62  ;;  %v649_v3 = vpop.eup %648  ;;  %660 = vlog2.f32 %v168_v11 }
  0x2c   : > { %v651_v5 = vpop.eup %650  ;;  %v216_v8 = vmul.f32 0.6931472, %v649_v3  ;;  %662 = vlog2.f32 %v169_v13 }
  0x2d   : > { %v653_v7 = vpop.eup %652  ;;  %v218_v9 = vmul.f32 0.6931472, %v651_v5  ;;  %664 = vlog2.f32 %v170_v15 }
  0x2e   : > { %v220_v10 = vmul.f32 0.6931472, %v653_v7  ;;  %v655_v12 = vpop.eup %654  ;;  %666 = vlog2.f32 %v171_v20 }
  0x2f   : > { %v657_v14 = vpop.eup %656  ;;  %v222_v17 = vmul.f32 0.6931472, %v655_v12  ;;  %668 = vlog2.f32 %v172_v22 }
  0x30   : > { %v659_v16 = vpop.eup %658  ;;  %v224_v18 = vmul.f32 0.6931472, %v657_v14 }
  0x31   : > { %426 = vadd.xlane.f32.xlu0 %v192_v36  ;;  %v226_v19 = vmul.f32 0.6931472, %v659_v16  ;;  %v661_v21 = vpop.eup %660 }
  0x32   : > { %428 = vadd.xlane.f32.xlu1 %v194_v37  ;;  %v663_v23 = vpop.eup %662  ;;  %v228_v25 = vmul.f32 0.6931472, %v661_v21 }
  0x33   : > { %430 = vadd.xlane.f32.xlu2 %v196_v38  ;;  %v665_v24 = vpop.eup %664  ;;  %v230_v26 = vmul.f32 0.6931472, %v663_v23 }
  0x34   : > { %v232_v27 = vmul.f32 0.6931472, %v665_v24  ;;  %v667_v28 = vpop.eup %666 }
  0x35   : > { %v669_v29 = vpop.eup %668  ;;  %v234_v30 = vmul.f32 0.6931472, %v667_v28 }
  0x36   : > { %v236_v31 = vmul.f32 0.6931472, %v669_v29 }
  0x39   : > { %432 = vadd.xlane.f32.xlu0 %v198_v45 }
  0x3a   : > { %434 = vadd.xlane.f32.xlu1 %v200_v46 }
  0x3b   : > { %436 = vadd.xlane.f32.xlu2 %v202_v47 }
  0x41   : > { %438 = vadd.xlane.f32.xlu0 %v204_v54 }
  0x42   : > { %440 = vadd.xlane.f32.xlu1 %v206_v55 }
  0x43   : > { %442 = vadd.xlane.f32.xlu2 %v208_v56 }
  0x49   : > { %444 = vadd.xlane.f32.xlu0 %v210_v63 }
  0x4a   : > { %446 = vadd.xlane.f32.xlu1 %v212_v0 }
  0x4b   : > { %448 = vadd.xlane.f32.xlu2 %v214_v1 }
  0x51   : > { %450 = vadd.xlane.f32.xlu0 %v216_v8 }
  0x52   : > { %452 = vadd.xlane.f32.xlu1 %v218_v9 }
  0x53   : > { %454 = vadd.xlane.f32.xlu2 %v220_v10 }
  0x59   : > { %456 = vadd.xlane.f32.xlu0 %v222_v17 }
  0x5a   : > { %458 = vadd.xlane.f32.xlu1 %v224_v18 }
  0x5b   : > { %460 = vadd.xlane.f32.xlu2 %v226_v19 }
  0x61   : > { %462 = vadd.xlane.f32.xlu0 %v228_v25 }
  0x62   : > { %464 = vadd.xlane.f32.xlu1 %v230_v26 }
  0x63   : > { %466 = vadd.xlane.f32.xlu2 %v232_v27 }
  0x69   : > { %468 = vadd.xlane.f32.xlu0 %v234_v30 }
  0x6a   : > { %470 = vadd.xlane.f32.xlu1 %v236_v31 }
  0x8c   : > { %v409_v32 = vpop.xlane.xlu0 %408 }
  0x8d   : > { %v413_v33 = vpop.xlane.xlu1 %412 }
  0x8e   : > { %v417_v34 = vpop.xlane.xlu2 %416 }
  0x94   : > { %v411_v35 = vpop.xlane.xlu0 %410 }
  0x95   : > { %v472_v36 = vadd.f32 %v411_v35, %v409_v32  ;;  %v415_v37 = vpop.xlane.xlu1 %414 }
  0x96   : > { %v419_v38 = vpop.xlane.xlu2 %418 }
  0x97   : > { %v473_v39 = vadd.f32 %v472_v36, %v413_v33 }
  0x99   : > { %v474_v40 = vadd.f32 %v473_v39, %v415_v37 }
  0x9b   : > { %v475_v41 = vadd.f32 %v474_v40, %v417_v34 }
  0x9c   : > { %v421_v42 = vpop.xlane.xlu0 %420 }
  0x9d   : > { %v476_v43 = vadd.f32 %v475_v41, %v419_v38  ;;  %v423_v44 = vpop.xlane.xlu1 %422 }
  0x9e   : > { %v425_v45 = vpop.xlane.xlu2 %424 }
  0x9f   : > { %v477_v46 = vadd.f32 %v476_v43, %v421_v42 }
  0xa1   : > { %v478_v47 = vadd.f32 %v477_v46, %v423_v44 }
  0xa3   : > { %v479_v48 = vadd.f32 %v478_v47, %v425_v45 }
  0xa4   : > { %v427_v49 = vpop.xlane.xlu0 %426 }
  0xa5   : > { %v480_v50 = vadd.f32 %v479_v48, %v427_v49  ;;  %v429_v51 = vpop.xlane.xlu1 %428 }
  0xa6   : > { %v431_v52 = vpop.xlane.xlu2 %430 }
  0xa7   : > { %v481_v53 = vadd.f32 %v480_v50, %v429_v51 }
  0xa9   : > { %v482_v54 = vadd.f32 %v481_v53, %v431_v52 }
  0xac   : > { %v433_v55 = vpop.xlane.xlu0 %432 }
  0xad   : > { %v483_v56 = vadd.f32 %v482_v54, %v433_v55  ;;  %v435_v57 = vpop.xlane.xlu1 %434 }
  0xae   : > { %v437_v58 = vpop.xlane.xlu2 %436 }
  0xaf   : > { %v484_v59 = vadd.f32 %v483_v56, %v435_v57 }
  0xb1   : > { %v485_v60 = vadd.f32 %v484_v59, %v437_v58 }
  0xb4   : > { %v439_v61 = vpop.xlane.xlu0 %438 }
  0xb5   : > { %v486_v62 = vadd.f32 %v485_v60, %v439_v61  ;;  %v441_v63 = vpop.xlane.xlu1 %440 }
  0xb6   : > { %v443_v0 = vpop.xlane.xlu2 %442 }
  0xb7   : > { %v487_v1 = vadd.f32 %v486_v62, %v441_v63 }
  0xb9   : > { %v488_v2 = vadd.f32 %v487_v1, %v443_v0 }
  0xbc   : > { %v445_v3 = vpop.xlane.xlu0 %444 }
  0xbd   : > { %v489_v4 = vadd.f32 %v488_v2, %v445_v3  ;;  %v447_v5 = vpop.xlane.xlu1 %446 }
  0xbe   : > { %v449_v6 = vpop.xlane.xlu2 %448 }
  0xbf   : > { %v490_v7 = vadd.f32 %v489_v4, %v447_v5 }
  0xc1   : > { %v491_v8 = vadd.f32 %v490_v7, %v449_v6 }
  0xc4   : > { %v451_v9 = vpop.xlane.xlu0 %450 }
  0xc5   : > { %v492_v10 = vadd.f32 %v491_v8, %v451_v9  ;;  %v453_v11 = vpop.xlane.xlu1 %452 }
  0xc6   : > { %v455_v12 = vpop.xlane.xlu2 %454 }
  0xc7   : > { %v493_v13 = vadd.f32 %v492_v10, %v453_v11 }
  0xc9   : > { %v494_v14 = vadd.f32 %v493_v13, %v455_v12 }
  0xcc   : > { %v457_v15 = vpop.xlane.xlu0 %456 }
  0xcd   : > { %v495_v16 = vadd.f32 %v494_v14, %v457_v15  ;;  %v459_v17 = vpop.xlane.xlu1 %458 }
  0xce   : > { %v461_v18 = vpop.xlane.xlu2 %460 }
  0xcf   : > { %v496_v19 = vadd.f32 %v495_v16, %v459_v17 }
  0xd1   : > { %v497_v20 = vadd.f32 %v496_v19, %v461_v18 }
  0xd4   : > { %v463_v21 = vpop.xlane.xlu0 %462 }
  0xd5   : > { %v498_v22 = vadd.f32 %v497_v20, %v463_v21  ;;  %v465_v23 = vpop.xlane.xlu1 %464 }
  0xd6   : > { %v467_v25 = vpop.xlane.xlu2 %466 }
  0xd7   : > { %v499_v24 = vadd.f32 %v498_v22, %v465_v23 }
  0xd9   : > { %v500_v26 = vadd.f32 %v499_v24, %v467_v25 }
  0xdc   : > { %v469_v27 = vpop.xlane.xlu0 %468 }
  0xdd   : > { %v501_v28 = vadd.f32 %v500_v26, %v469_v27  ;;  %v471_v29 = vpop.xlane.xlu1 %470 }
  0xdf   : > { %v502_v30 = vadd.f32 %v501_v28, %v471_v29 }
  0xe1   : > { %v503_v31 = vrot.slane %v502_v30, 4 }
  0xe3   : > { %v504_v32 = vadd.f32 %v503_v31, %v502_v30 }
  0xe5   : > { %v505_v33 = vrot.slane %v504_v32, 2 }
  0xe7   : > { %v506_v34 = vadd.f32 %v505_v33, %v504_v32 }
  0xe9   : > { %v507_v35 = vrot.slane %v506_v34, 1 }
  0xeb   : > { %v508_v36 = vadd.f32 %v507_v35, %v506_v34 }
  0xed   : > { %510 = vst.msk [vmem:[%s140_s16] sm:$0x1] %vm509_vm0, %v508_v36 }
  0xee PF: > { %s11_s8 = sadd.s32 1, %s692_s8   ;;  %s777_s6 = smov %s688_s7 }
  0xef   : > { %p8_p5 = scmp.ge.s32.totalorder %s11_s8, 4   ;;  %s778_s7 = smov %s780_s9 }
  0xf1   :  { %10 = sbr.rel (!%p8_p5) target bundleno = 2 (0x2), region = 66 }

// kernel: rate_distortion_loss.3
= control target key start
LH: loop header
LB: loop body
LE: loop exit
PB: predicated region body
PF: predicated region fallthrough
CT: control target
= control target key end

     0   :  { %s478_s9 = smov 0   ;;  %s480_s10 = smov 0   ;;  %s518_s0 = inlined_call_operand.vmem [shape: f32[2,3,1,2,128], index: 0, kind: input, shape index: {}]   ;;  %s519_s1 = inlined_call_operand.vmem [shape: f32[2,3,1,2,128], index: 1, kind: input, shape index: {}]   ;;  %s520_s2 = inlined_call_operand.vmem [shape: f32[2,1,3,1], index: 2, kind: output, shape index: {}]  }
   0x1   :  { %s482_s11 = smov 0  }
   0x2 LB: > { %s31_s12 = sadd.s32 1, %s457_s10  ;;  %p408_p0 = scmp.ge.s32.totalorder %s461_s11, 1  ;;  %s461_s11 = sphi %s482_s11, %s12_s11   ;;  %s457_s10 = sphi %s480_s10, %s522_s10   ;;  %s453_s9 = sphi %s478_s9, %s521_s9  }
   0x3   : > { %p33_p1 = scmp.ge.s32.totalorder %s31_s12, 2  ;;  %p163_p2 = scmp.lt.s32.totalorder %s461_s11, 3 }
   0x5   : > { %s524_s12 = smov (%p33_p1, %s31_s12), 0  ;;  %p164_p3 = pnand %p408_p0, %p163_p2 }
   0x6   : > { %p204_p4 = scmp.lt.s32.totalorder (!%p164_p3), %s453_s9, 1 }
   0x7   : > { %167 = sbr.rel (%p164_p3) target bundleno = 277 (0x115), region = 28 }
   0xc   : > { %s526_s9 = smov (!%p204_p4, %s453_s9), 1  ;;  %vm271_vm0 = vcmask 1041408   ;;  %v284_v19 = vlaneseq  ;;  %vm289_vm1 = vcmask 1041409   ;;  %vm291_vm2 = vcmask 1042434  }
   0xd   : > { %s414_s13 = smul.u32 6, %s526_s9  ;;  %vm294_vm3 = vcmask 10240   ;;  %s411_s20 = sshll.u32 %s526_s9, 2  ;;  %vm298_vm4 = vcmask 2048  }
   0xe   : > { %v285_v20 = vand.u32 127, %v284_v19  ;;  %s232_s23 = scalar_lea.vmem %s520_s2, %s411_s20 }
   0xf   : > { %s214_s16 = scalar_lea.vmem %s518_s0, %s414_s13  ;;  %s225_s19 = scalar_lea.vmem %s519_s1, %s414_s13 }
  0x10   : > { %v233_v0 = vld [vmem:[%s214_s16] sm:$0x3]  ;;  %v234_v2 = vld [vmem:[%s214_s16 + $0x2] sm:$0x3]  ;;  %v235_v5 = vld [vmem:[%s214_s16 + $0x4] sm:$0x3] }
  0x11   : > { %v236_v1 = vld [vmem:[%s225_s19] sm:$0x3]  ;;  %v237_v4 = vld [vmem:[%s225_s19 + $0x2] sm:$0x3]  ;;  %v238_v6 = vld [vmem:[%s225_s19 + $0x4] sm:$0x3] }
  0x12   : > { %v239_v3 = vsub.f32 %v233_v0, %v236_v1  ;;  %v240_v7 = vsub.f32 %v234_v2, %v237_v4  ;;  %v241_v8 = vsub.f32 %v235_v5, %v238_v6 }
  0x14   : > { %v242_v9 = vmul.f32 %v239_v3, %v239_v3  ;;  %v243_v10 = vmul.f32 %v240_v7, %v240_v7  ;;  %v244_v11 = vmul.f32 %v241_v8, %v241_v8 }
  0x16   : > { %249 = vst [vmem:[#allocation2] sm:$0x3] %v242_v9 }
  0x17   : > { %250 = vst [vmem:[#allocation2 + $0x2] sm:$0x3] %v243_v10 }
  0x18   : > { %251 = vst [vmem:[#allocation2 + $0x4] sm:$0x3] %v244_v11 }
  0x1d   : > { %v268_v12 = vld [vmem:[#allocation2] sm:$0x3] }
  0x1e   : > { %v272_v13 = vsel %vm271_vm0, %v268_v12, 0.0  ;;  %v269_v16 = vld [vmem:[#allocation2 + $0x2] sm:$0x3] }
  0x1f   : > { %273 = vadd.xlane.f32.xlu0 %v272_v13  ;;  %v270_v14 = vld [vmem:[#allocation2 + $0x4] sm:$0x3]  ;;  %v275_v17 = vsel %vm271_vm0, %v269_v16, 0.0 }
  0x20   : > { %v278_v15 = vsel %vm271_vm0, %v270_v14, 0.0 }
  0x21   : > { %279 = vadd.xlane.f32.xlu1 %v278_v15 }
  0x27   : > { %276 = vadd.xlane.f32.xlu0 %v275_v17 }
  0x92   : > { %v274_v18 = vpop.xlane.xlu0 %273 }
  0x93   : > { %v286_v24 = vperm.slane %v274_v18, %v285_v20 }
  0x94   : > { %v280_v21 = vpop.xlane.xlu1 %279 }
  0x95   : > { %v288_v23 = vperm.slane %v280_v21, %v285_v20 }
  0x9a   : > { %v277_v22 = vpop.xlane.xlu0 %276 }
  0x9b   : > { %v287_v25 = vperm.slane %v277_v22, %v285_v20 }
  0x9d   : > { %v290_v26 = vsel %vm289_vm1, %v287_v25, %v286_v24 }
  0x9e   : > { %v292_v27 = vsel %vm291_vm2, %v288_v23, %v290_v26 }
  0x9f   : > { %v295_v28 = vsel %vm294_vm3, %v292_v27, 0.0 }
  0xa0   : > { %296 = vadd.xlane.f32.xlu1 %v295_v28 }
 0x113   : > { %v297_v29 = vpop.xlane.xlu1 %296 }
 0x114   : > { %299 = vst.msk [vmem:[%s232_s23] sm:$0x7] %vm298_vm4, %v297_v29 }
 0x115 PF: > { %s12_s11 = sadd.s32 1, %s461_s11   ;;  %s521_s9 = smov %s457_s10 }
 0x116   : > { %p9_p5 = scmp.ge.s32.totalorder %s12_s11, 4   ;;  %s522_s10 = smov %s524_s12 }
 0x118   :  { %11 = sbr.rel (!%p9_p5) target bundleno = 2 (0x2), region = 73 }

</bundles_post_ra>
